<compile_context>
chip_gen: v6e
topology: v6e:2x2x1
jax: 0.10.0
libtpu: 0.0.40
codegen_flags: <defaults>
</compile_context>

<pallas_src>
import math

import jax
import jax.numpy as jnp
from jax import lax
from jax.experimental import pallas as pl
from jax.experimental.pallas import tpu as pltpu

_INV_SQRT2 = 1.0 / math.sqrt(2.0)


def _round_up(x, m):
    return ((x + m - 1) // m) * m


def _supports_buffered_pipeline_mode():
    """Probe (no compile) whether BlockSpec accepts pipeline_mode=Buffered."""
    if not hasattr(pl, "Buffered"):
        return False
    try:
        pl.BlockSpec((8, 128), lambda i: (0, 0), pipeline_mode=pl.Buffered(1))
    except TypeError:
        return False
    return True


def _device_kind():
    try:
        return jax.devices()[0].device_kind.lower()
    except Exception:
        return ""


def _vmem_capacity_bytes():
    try:
        return int(pltpu.get_tpu_info().vmem_capacity_bytes)
    except Exception:
        # v7x: 64 MiB per TensorCore; v5e/v6e: 128 MiB.
        return (64 << 20) if "v7" in _device_kind() else (128 << 20)


def _make_mlp_kernel(compute_dtype, gelu_dtype):
    def kernel(x_ref, w1_ref, b1_ref, w2_ref, b2_ref, o_ref):
        # fc1: bf16 operands, f32 MXU accumulation.  x cast happens in VMEM.
        x = x_ref[...].astype(compute_dtype)
        h = jnp.dot(x, w1_ref[...], preferred_element_type=jnp.float32)
        h = h + b1_ref[...]                      # bias add in f32
        # Exact (erf-based) GELU, matching torch.nn.GELU default.  bf16 on
        # chips with bf16 VPU/EUP (v6e/v7x), f32 on v5e.
        h = h.astype(gelu_dtype)
        g = 0.5 * h * (1.0 + lax.erf(h * _INV_SQRT2))
        # dropout p=0.0 -> identity
        out = jnp.dot(g.astype(compute_dtype), w2_ref[...],
                      preferred_element_type=jnp.float32)
        out = out + b2_ref[...]
        o_ref[...] = out.astype(o_ref.dtype)
    return kernel


def mlp_pallas(x, w1, b1, w2, b2, *, tm=None, compute_dtype=jnp.bfloat16):
    """x: (B, N, C); w1: (C, H); b1: (H,); w2: (H, O); b2: (O,)."""
    B, N, C = x.shape
    H = w1.shape[1]
    O = w2.shape[1]
    M = B * N
    out_dtype = x.dtype

    # Only the hidden dim is lane-padded; C and O stay native (block dims that
    # equal the full array dim are legal; non-128-multiple O => masked stores,
    # cheaper than an extra HBM slice pass for mem-bound Swin shapes).
    Hp = _round_up(H, 128)

    kind = _device_kind()
    vmem_cap = _vmem_capacity_bytes()

    # bf16 elementwise GELU only where VPU/EUP have bf16 paths (not v5e).
    if jnp.dtype(compute_dtype) == jnp.dtype(jnp.float32) or "v5" in kind:
        gelu_dtype = jnp.float32
    else:
        gelu_dtype = compute_dtype

    # Row tile: 512 by default; 256 on 64 MiB-VMEM parts (v7x) with big hidden
    # widths; shrink so the "parallel" row axis has >=2 steps when M allows.
    if tm is None:
        tm = 256 if (vmem_cap <= (64 << 20) and Hp >= 4096) else 512
        while tm > 16 and M > 16 and pl.cdiv(M, tm) < 2:
            tm //= 2
    tm = max(16, _round_up(tm, 16))
    tm = min(tm, _round_up(M, 16))
    grid_m = pl.cdiv(M, tm)

    # Host-side prep only touches the small weight/bias tensors.
    x2d = x.reshape(M, C)
    w1p = jnp.pad(w1, ((0, 0), (0, Hp - H))).astype(compute_dtype)
    w2p = jnp.pad(w2, ((0, Hp - H), (0, 0))).astype(compute_dtype)
    b1p = jnp.pad(b1, (0, Hp - H)).reshape(1, Hp).astype(jnp.float32)
    b2p = b2.reshape(1, O).astype(jnp.float32)

    single_buffer = _supports_buffered_pipeline_mode()
    wbuf = 1 if single_buffer else 2

    cb = jnp.dtype(compute_dtype).itemsize
    xb = jnp.dtype(x.dtype).itemsize
    ob = jnp.dtype(out_dtype).itemsize
    gb = jnp.dtype(gelu_dtype).itemsize
    vmem_est = (
        2 * tm * C * xb                                   # dbl-buffered x tile
        + 2 * tm * O * ob                                 # dbl-buffered out tile
        + wbuf * ((C * Hp + Hp * O) * cb + (Hp + O) * 4)  # weights + biases
        + tm * C * cb                                     # bf16 cast of x
        + tm * Hp * 4                                     # f32 fc1 result
        + tm * Hp * gb                                    # GELU result
        + tm * Hp * cb                                    # bf16 cast of GELU
        + tm * O * 4                                      # f32 fc2 result
    )
    # Cap the request at ~85% of physical VMEM (Mosaic scratch headroom, v7x).
    vmem_limit = int(min(int(0.85 * vmem_cap), max(32 << 20, 2 * vmem_est)))

    def resident_spec(shape):
        if single_buffer:
            # Constant index_map => fetched once; one buffer is enough.
            return pl.BlockSpec(shape, lambda i: (0, 0),
                                pipeline_mode=pl.Buffered(1))
        return pl.BlockSpec(shape, lambda i: (0, 0))

    cost = pl.CostEstimate(
        flops=2 * M * C * Hp + 2 * M * Hp * O,
        transcendentals=M * Hp,
        bytes_accessed=(M * C * xb + (C * Hp + Hp * O) * cb
                        + (Hp + O) * 4 + M * O * ob),
    )

    kernel = _make_mlp_kernel(compute_dtype, gelu_dtype)
    out2d = pl.pallas_call(
        kernel,
        out_shape=jax.ShapeDtypeStruct((M, O), out_dtype),
        grid_spec=pltpu.PrefetchScalarGridSpec(
            num_scalar_prefetch=0,
            grid=(grid_m,),
            in_specs=[
                pl.BlockSpec((tm, C), lambda i: (i, 0)),   # x row tile (f32)
                resident_spec((C, Hp)),                    # w1 (bf16, resident)
                resident_spec((1, Hp)),                    # b1 (f32)
                resident_spec((Hp, O)),                    # w2 (bf16, resident)
                resident_spec((1, O)),                     # b2 (f32)
            ],
            out_specs=pl.BlockSpec((tm, O), lambda i: (i, 0)),
        ),
        compiler_params=pltpu.CompilerParams(
            dimension_semantics=("parallel",),
            vmem_limit_bytes=vmem_limit,
        ),
        cost_estimate=cost,
    )(x2d, w1p, b1p, w2p, b2p)

    return out2d.reshape(B, N, O)


def _reference_mlp(x, w1, b1, w2, b2):
    h = jnp.dot(x, w1) + b1
    h = 0.5 * h * (1.0 + lax.erf(h * _INV_SQRT2))
    return jnp.dot(h, w2) + b2


if __name__ == "__main__":
    # Module config: in_features=32, hidden_features=64, out_features=32, drop=0.0
    B, N = 2, 8
    in_features, hidden_features, out_features = 32, 64, 32

    key = jax.random.PRNGKey(0)
    kx, kw1, kb1, kw2, kb2 = jax.random.split(key, 5)

    x = jax.random.normal(kx, (B, N, in_features), dtype=jnp.float32)

    # Deterministic param init mimicking nn.Linear's uniform(-1/sqrt(fan_in), ...)
    lim1 = 1.0 / math.sqrt(in_features)
    lim2 = 1.0 / math.sqrt(hidden_features)
    w1 = jax.random.uniform(kw1, (in_features, hidden_features), jnp.float32, -lim1, lim1)
    b1 = jax.random.uniform(kb1, (hidden_features,), jnp.float32, -lim1, lim1)
    w2 = jax.random.uniform(kw2, (hidden_features, out_features), jnp.float32, -lim2, lim2)
    b2 = jax.random.uniform(kb2, (out_features,), jnp.float32, -lim2, lim2)

    out = mlp_pallas(x, w1, b1, w2, b2)
    out = jax.block_until_ready(out)
    assert out.shape == (B, N, out_features)

    ref = _reference_mlp(x, w1, b1, w2, b2)
    # bf16 matmul operands (f32 accumulation) + bf16 GELU on v6e/v7x =>
    # loosened tolerance vs the all-f32 reference.
    err = float(jnp.max(jnp.abs(out - ref)))
    assert jnp.allclose(out, ref, atol=8e-2, rtol=8e-2), f"max abs err {err}"

    print("KERNEL_OK")
</pallas_src>

<mosaic_0001>
module attributes {stable_mosaic.version = 11 : i64} {
  func.func @kernel(%arg0: i32, %arg1: memref<16x32xf32, #tpu.memory_space<vmem>>, %arg2: memref<32x128xbf16, #tpu.memory_space<vmem>>, %arg3: memref<1x128xf32, #tpu.memory_space<vmem>>, %arg4: memref<128x32xbf16, #tpu.memory_space<vmem>>, %arg5: memref<1x32xf32, #tpu.memory_space<vmem>>, %arg6: memref<16x32xf32, #tpu.memory_space<vmem>>) attributes {dimension_semantics = [#tpu.dimension_semantics<parallel>], iteration_bounds = array<i64: 1>, scalar_prefetch = 0 : i64, scratch_operands = 0 : i64, tpu.core_type = #tpu.core_type<tc>, window_params = [{transform_indices = @transform_0, window_bounds = array<i64: 16, 32>}, {pipeline_mode = #tpu.pipeline_mode<synchronous>, transform_indices = @transform_1, window_bounds = array<i64: 32, 128>}, {pipeline_mode = #tpu.pipeline_mode<synchronous>, transform_indices = @transform_2, window_bounds = array<i64: 1, 128>}, {pipeline_mode = #tpu.pipeline_mode<synchronous>, transform_indices = @transform_3, window_bounds = array<i64: 128, 32>}, {pipeline_mode = #tpu.pipeline_mode<synchronous>, transform_indices = @transform_4, window_bounds = array<i64: 1, 32>}, {transform_indices = @transform_5, window_bounds = array<i64: 16, 32>}]} {
    %c0 = arith.constant 0 : index
    %c0_0 = arith.constant 0 : index
    %0 = vector.load %arg1[%c0, %c0_0] : memref<16x32xf32, #tpu.memory_space<vmem>>, vector<16x32xf32>
    %1 = arith.truncf %0 : vector<16x32xf32> to vector<16x32xbf16>
    %c0_1 = arith.constant 0 : index
    %c0_2 = arith.constant 0 : index
    %2 = vector.load %arg2[%c0_1, %c0_2] : memref<32x128xbf16, #tpu.memory_space<vmem>>, vector<32x128xbf16>
    %cst = arith.constant dense<0.000000e+00> : vector<16x128xf32>
    %3 = tpu.matmul %1, %2, %cst {dimension_numbers = #tpu.dot_dimension_numbers<[1], [0], [0], [1], [0, 0, 1, 1], [], []>} : vector<16x32xbf16>, vector<32x128xbf16>, vector<16x128xf32> -> vector<16x128xf32>
    %c0_3 = arith.constant 0 : index
    %c0_4 = arith.constant 0 : index
    %4 = vector.load %arg3[%c0_3, %c0_4] : memref<1x128xf32, #tpu.memory_space<vmem>>, vector<1x128xf32>
    %5 = vector.broadcast %4 : vector<1x128xf32> to vector<16x128xf32>
    %6 = arith.addf %3, %5 : vector<16x128xf32>
    %7 = arith.truncf %6 : vector<16x128xf32> to vector<16x128xbf16>
    %cst_5 = arith.constant 5.000000e-01 : bf16
    %8 = vector.broadcast %cst_5 : bf16 to vector<16x128xbf16>
    %9 = arith.mulf %8, %7 : vector<16x128xbf16>
    %cst_6 = arith.constant 7.070310e-01 : bf16
    %10 = vector.broadcast %cst_6 : bf16 to vector<16x128xbf16>
    %11 = arith.mulf %7, %10 : vector<16x128xbf16>
    %12 = math.erf %11 : vector<16x128xbf16>
    %cst_7 = arith.constant 1.000000e+00 : bf16
    %13 = vector.broadcast %cst_7 : bf16 to vector<16x128xbf16>
    %14 = arith.addf %13, %12 : vector<16x128xbf16>
    %15 = arith.mulf %9, %14 : vector<16x128xbf16>
    %c0_8 = arith.constant 0 : index
    %c0_9 = arith.constant 0 : index
    %16 = vector.load %arg4[%c0_8, %c0_9] : memref<128x32xbf16, #tpu.memory_space<vmem>>, vector<128x32xbf16>
    %cst_10 = arith.constant dense<0.000000e+00> : vector<16x32xf32>
    %17 = tpu.matmul %15, %16, %cst_10 {dimension_numbers = #tpu.dot_dimension_numbers<[1], [0], [0], [1], [0, 0, 1, 1], [], []>} : vector<16x128xbf16>, vector<128x32xbf16>, vector<16x32xf32> -> vector<16x32xf32>
    %c0_11 = arith.constant 0 : index
    %c0_12 = arith.constant 0 : index
    %18 = vector.load %arg5[%c0_11, %c0_12] : memref<1x32xf32, #tpu.memory_space<vmem>>, vector<1x32xf32>
    %19 = vector.broadcast %18 : vector<1x32xf32> to vector<16x32xf32>
    %20 = arith.addf %17, %19 : vector<16x32xf32>
    %c0_13 = arith.constant 0 : index
    %c0_14 = arith.constant 0 : index
    %21 = vector.load %arg6[%c0_13, %c0_14] : memref<16x32xf32, #tpu.memory_space<vmem>>, vector<16x32xf32>
    tpu.vector_store %arg6[%c0_13, %c0_14], %20 {strides = array<i32>} : memref<16x32xf32, #tpu.memory_space<vmem>>, vector<16x32xf32>,
    return
  }
  func.func @transform_0(%arg0: i32) -> (i32, i32) {
    %c0_i32 = arith.constant 0 : i32
    %c0_i32_0 = arith.constant 0 : i32
    return %arg0, %c0_i32 : i32, i32
  }
  func.func @transform_1(%arg0: i32) -> (i32, i32) {
    %c0_i32 = arith.constant 0 : i32
    %c0_i32_0 = arith.constant 0 : i32
    %c0_i32_1 = arith.constant 0 : i32
    return %c0_i32, %c0_i32_0 : i32, i32
  }
  func.func @transform_2(%arg0: i32) -> (i32, i32) {
    %c0_i32 = arith.constant 0 : i32
    %c0_i32_0 = arith.constant 0 : i32
    %c0_i32_1 = arith.constant 0 : i32
    return %c0_i32, %c0_i32_0 : i32, i32
  }
  func.func @transform_3(%arg0: i32) -> (i32, i32) {
    %c0_i32 = arith.constant 0 : i32
    %c0_i32_0 = arith.constant 0 : i32
    %c0_i32_1 = arith.constant 0 : i32
    return %c0_i32, %c0_i32_0 : i32, i32
  }
  func.func @transform_4(%arg0: i32) -> (i32, i32) {
    %c0_i32 = arith.constant 0 : i32
    %c0_i32_0 = arith.constant 0 : i32
    %c0_i32_1 = arith.constant 0 : i32
    return %c0_i32, %c0_i32_0 : i32, i32
  }
  func.func @transform_5(%arg0: i32) -> (i32, i32) {
    %c0_i32 = arith.constant 0 : i32
    %c0_i32_0 = arith.constant 0 : i32
    return %arg0, %c0_i32 : i32, i32
  }
}

</mosaic_0001>

<bundles_post_ra>
// kernel: tpu_custom_call.1
= control target key start
LH: loop header
LB: loop body
LE: loop exit
PB: predicated region body
PF: predicated region fallthrough
CT: control target
= control target key end

     0   :  { %v324_v1 = vmov 0.0   ;;  %vm325_vm0 = vmmov 0   ;;  %vm51_vm1 = vcmask 261120   ;;  %s407_s0 = inlined_call_operand.vmem [shape: f32[16,32], index: 0, kind: input, shape index: {}]   ;;  %s408_s1 = inlined_call_operand.vmem [shape: bf16[32,128], index: 1, kind: input, shape index: {}]   ;;  %s409_s2 = inlined_call_operand.vmem [shape: f32[1,128], index: 2, kind: input, shape index: {}]   ;;  %s410_s3 = inlined_call_operand.vmem [shape: bf16[128,32], index: 3, kind: input, shape index: {}]   ;;  %s411_s4 = inlined_call_operand.vmem [shape: f32[1,32], index: 4, kind: input, shape index: {}]   ;;  %s412_s5 = inlined_call_operand.hbm [shape: f32[16,32], index: 5, kind: output, shape index: {}]  }
   0x1   :  { %v290_v0 = vld [vmem:[%s408_s1 + $0x8] sm:$0xff]   ;;  %257 = vmatprep.subr.bf16.mxu0 %v324_v1  ;;  %v291_v2 = vld [vmem:[%s408_s1] sm:$0xff]   ;;  %265 = vmatprep.subr.bf16.mxu1 %v324_v1  ;;  %v292_v5 = vld [vmem:[%s410_s3 + $0x38] sm:$0xff]  }
   0x2   :  { %258 = vmatpush3.bf16.msra.mxu0 %v290_v0  ;;  %261 = vmatprep.mubr.msk.bf16.mxu0 %vm325_vm0, %v324_v1  ;;  %v25_v3 = vld [vmem:[%s407_s0] sm:$0xff]  ;;  %v26_v4 = vld [vmem:[%s407_s0 + $0x8] sm:$0xff] }
   0x3   :  { %259 = vmatprep.subr.bf16.mxu0 %v324_v1  ;;  %281 = vmatprep.mubr.msk.bf16.mxu1 %vm325_vm0, %v324_v1  ;;  %v27_v6 = vpack.c.bf16 %v26_v4, %v25_v3 }
   0x4   :  { %266 = vmatpush3.bf16.msra.mxu1 %v292_v5 }
   0x5   :  { %267 = vmatprep.subr.bf16.mxu1 %v324_v1 }
   0x6   :  { %260 = vmatpush3.bf16.msra.mxu0 %v291_v2 }
   0x7   :  { %10 = vsyncpa [#allocation3], 0  ;;  %v293_v7 = vld [vmem:[%s410_s3 + $0x30] sm:$0xff]   ;;  %v294_v8 = vld [vmem:[%s410_s3 + $0x28] sm:$0xff]  }
   0x8   :  { %268 = vmatpush3.bf16.msra.mxu1 %v293_v7  ;;  %v295_v9 = vld [vmem:[%s410_s3 + $0x20] sm:$0xff]   ;;  %v296_v10 = vld [vmem:[%s410_s3 + $0x18] sm:$0xff]   ;;  %v297_v11 = vld [vmem:[%s410_s3 + $0x10] sm:$0xff]  }
   0x9   :  { %262 = vmatmul.mubr.msk.bf16.vlgmr.msra.gmra.mxu0 %vm51_vm1, %v27_v6  ;;  %269 = vmatprep.subr.bf16.mxu1 %v324_v1  ;;  %v298_v12 = vld [vmem:[%s410_s3 + $0x8] sm:$0xff]   ;;  %v299_v13 = vld [vmem:[%s410_s3] sm:$0xff]  }
   0xa   :  { %v232_v15 = vld [vmem:[%s409_s2] ss:$0 sm:$0xff]  ;;  %s326_s2 = smov [#allocation2]  }
   0xb   :  { %v236_v27 = vld [vmem:[%s411_s4] ss:$0 sm:$0xff]  ;;  %s221_s18 = sshll.u32 %s326_s2, 4  ;;  %s222_s18 = int_to_ptr.vmem [resolvable:$true] %s221_s18 }
   0xc   :  { %270 = vmatpush3.bf16.msra.mxu1 %v294_v8  ;;  %s302_s19 = scalar_lea.vmem %s222_s18, 256  ;;  %p307_p1 = scmp.lt.s32.totalorder %s222_s18, %s222_s18 }
   0xd   :  { %271 = vmatprep.subr.bf16.mxu1 %v324_v1  ;;  %p303_p0 = scmp.ne.s32.totalorder %s222_s18, %s302_s19  ;;  %p308_p2 = scmp.lt.s32.totalorder %s302_s19, %s302_s19 }
   0xf   :  { %p309_p3 = por %p308_p2, %p307_p1 }
  0x10   :  { %272 = vmatpush3.bf16.msra.mxu1 %v295_v9 }
  0x11   :  { %273 = vmatprep.subr.bf16.mxu1 %v324_v1  ;;  %p310_p4 = pnand %p309_p3, %p303_p0 }
  0x14   :  { %274 = vmatpush3.bf16.msra.mxu1 %v296_v10 }
  0x15   :  { %275 = vmatprep.subr.bf16.mxu1 %v324_v1 }
  0x18   :  { %276 = vmatpush3.bf16.msra.mxu1 %v297_v11 }
  0x19   :  { %277 = vmatprep.subr.bf16.mxu1 %v324_v1 }
  0x1c   :  { %278 = vmatpush3.bf16.msra.mxu1 %v298_v12 }
  0x1d   :  { %279 = vmatprep.subr.bf16.mxu1 %v324_v1 }
  0x20   :  { %280 = vmatpush3.bf16.msra.mxu1 %v299_v13 }
  0xc9   :  { %v89_v14 = vpop.f32.mrf.mxu0 }
  0xca   :  { %v90_v18 = vadd.f32 %v232_v15, %v89_v14 }
  0xcb   :  { %v263_v16 = vpop.f32.mrf.mxu0 }
  0xcd   :  { %v92_v17 = vpop.f32.mrf.mxu0 }
  0xce   :  { %v93_v19 = vadd.f32 %v232_v15, %v92_v17 }
  0xcf   :  { %v264_v20 = vpop.f32.mrf.mxu0 }
  0xd0   :  { %v96_v21 = vpack.c.bf16 %v93_v19, %v90_v18 }
  0xd2   :  { %v98_v22 = vmul.bf16 1060454197, %v96_v21  ;;  %v97_v24 = vmul.bf16 1056980736, %v96_v21 }
  0xd4   :  { %300 = verf.bf16 %v98_v22 }
  0xe2   :  { %v301_v23 = vpop.eup %300 }
  0xe3   :  { %v100_v25 = vadd.bf16 1065369472, %v301_v23 }
  0xe5   :  { %v101_v26 = vmul.bf16 %v100_v25, %v97_v24 }
  0xe7   :  { %282 = vmatmul.mubr.bf16.vlgmr.msra.gmra.mxu1 %v101_v26 }
 0x1a7   :  { %v207_v28 = vpop.f32.mrf.mxu1 }
 0x1a8   :  { %v208_v29 = vadd.f32 %v236_v27, %v207_v28 }
 0x1a9   :  { %v283_v30 = vpop.f32.mrf.mxu1 }
 0x1aa   :  { %214 = vst.msk [vmem:[#allocation2] sm:$0xff] %vm51_vm1, %v208_v29 }
 0x1ab   :  { %v210_v31 = vpop.f32.mrf.mxu1 }
 0x1ac   :  { %v211_v32 = vadd.f32 %v236_v27, %v210_v31 }
 0x1ad   :  { %v284_v33 = vpop.f32.mrf.mxu1 }
 0x1ae   :  { %215 = vst.msk [vmem:[#allocation2 + $0x8] sm:$0xff] %vm51_vm1, %v211_v32 }
 0x1af   :  { %313 = shalt.err (!%p310_p4)
}
 0x1b0   :  { %s327_s4 = smov 128   ;;  %s328_s20 = smov 8  }
 0x1b1   :  { %227 = dma.vmem_to_hbm [thread:$0]  %s222_s18, 256, %s412_s5, [#allocation3], %s327_s4, %s327_s4, %s328_s20  }
 0x1b2   :  { %322 = dma.done.wait [#allocation3], 256  }
 0x1b3   :  { %323 = vsyncadd [#allocation3], 4294967040 }
 0x1b4   :  { %231 = vsyncpa [#allocation3], 1 }

</bundles_post_ra>
